<compile_context>
chip_gen: v5e
topology: v5e:2x2
jax: 0.10.0
libtpu: 0.0.40
codegen_flags: <defaults>
</compile_context>

<pallas_src>
import functools

import jax
import jax.numpy as jnp
from jax.experimental import pallas as pl
from jax.experimental.pallas import tpu as pltpu


LANES = 128
SUBLANES = 8
# Only bother splitting the slab across TensorCores (v7x) when it is at least
# this many rows; below that the extra ~0.35 us pipeline step is not worth it.
MIN_ROWS_FOR_CORE_SPLIT = 256


def _round_up(x, n):
    return ((x + n - 1) // n) * n


@functools.lru_cache(maxsize=1)
def _device_kind():
    """Best-effort TPU device-kind string ('' if unknown / not TPU)."""
    try:
        dev = jax.devices()[0]
        if dev.platform == "tpu":
            return (getattr(dev, "device_kind", "") or "").lower()
    except Exception:  # pragma: no cover - defensive
        pass
    return ""


def _tensorcores_per_chip():
    # v7x has 2 TensorCores per chip; v5e/v6e have 1.  Unknown -> assume 1.
    return 2 if "v7" in _device_kind() else 1


def _bf16_vector_units():
    # bf16 VPU/EUP exist on v6e/v7x; v5e must upcast.  Unknown -> be safe (f32).
    kind = _device_kind()
    return ("v6" in kind) or ("v7" in kind)


def _exp_gf_kernel(p_ref, x_ref, o_ref, *, compute_dtype):
    # p_ref: SMEM (3,) f32 -> [m, -1/(2*s^2), 2*exp(-0.001)]
    m = p_ref[0].astype(compute_dtype)
    neg_inv_2s2 = p_ref[1].astype(compute_dtype)
    scale = p_ref[2].astype(compute_dtype)
    x = x_ref[...].astype(compute_dtype)
    d = x - m
    y = scale * jnp.exp(d * d * neg_inv_2s2) - 1.0
    o_ref[...] = y.astype(o_ref.dtype)


def _ref_formula(x, m, s):
    return jnp.exp(-(x - m) ** 2 / (2.0 * s ** 2) - 0.001) * 2.0 - 1.0


@functools.partial(jax.jit, static_argnames=("block_rows", "min_pallas_elems"))
def exponential_gf(x, m, s, *, block_rows=1024, min_pallas_elems=1024):
    """Elementwise Exponential growth function via Pallas.

    x: any-shaped float array (e.g. NCHW [2, 4, 16, 16]).
    m, s: scalar parameters (s == 0 yields inf/NaN just like the reference).
    """
    orig_shape = x.shape
    orig_dtype = x.dtype
    n = x.size

    # Small-input fast path: a standalone pallas_call is dominated by fixed
    # launch/pipeline overhead; plain XLA is strictly faster for tiny tensors.
    if n < min_pallas_elems:
        return _ref_formula(x.astype(jnp.float32),
                            jnp.asarray(m, jnp.float32),
                            jnp.asarray(s, jnp.float32)).astype(orig_dtype)

    rows = pl.cdiv(n, LANES)
    rows8 = _round_up(rows, SUBLANES)          # lane-dense slab height
    n_slab = rows8 * LANES                     # pad <= SUBLANES*LANES - 1 elems

    # Block rows: biggest tile that fits, multiple of 8, never larger than the
    # slab.  On multi-TC chips (v7x) split large slabs so the "parallel" grid
    # axis has >= num_cores steps; skip the split on single-TC v5e/v6e and on
    # small slabs (pure overhead there).
    br = min(_round_up(block_rows, SUBLANES), rows8)
    ncores = _tensorcores_per_chip()
    if ncores > 1 and rows8 >= MIN_ROWS_FOR_CORE_SPLIT:
        per_core = _round_up(pl.cdiv(rows8, ncores), SUBLANES)
        br = min(br, per_core)
    grid = (pl.cdiv(rows8, br),)               # ragged last block is fine

    xf = x.reshape(-1)
    if n_slab != n:
        xf = jnp.pad(xf, (0, n_slab - n))
    x2d = xf.reshape(rows8, LANES)

    # Precompute scalar constants (folded by XLA; no per-element divide).
    mf = jnp.asarray(m, jnp.float32)
    sf = jnp.asarray(s, jnp.float32)
    params = jnp.stack([
        mf,
        -1.0 / (2.0 * sf * sf),
        jnp.float32(2.0) * jnp.exp(jnp.float32(-0.001)),
    ])

    # bf16-native compute only where the VPU/EUP support it (v6e/v7x);
    # otherwise (f32 inputs, v5e, or unknown chip) upcast to f32.
    if orig_dtype == jnp.bfloat16 and _bf16_vector_units():
        compute_dtype = jnp.bfloat16
    else:
        compute_dtype = jnp.float32

    out2d = pl.pallas_call(
        functools.partial(_exp_gf_kernel, compute_dtype=compute_dtype),
        out_shape=jax.ShapeDtypeStruct((rows8, LANES), orig_dtype),
        grid=grid,
        in_specs=[
            pl.BlockSpec(memory_space=pltpu.MemorySpace.SMEM),   # packed scalars
            pl.BlockSpec((br, LANES), lambda i: (i, 0)),          # x tile
        ],
        out_specs=pl.BlockSpec((br, LANES), lambda i: (i, 0)),
        compiler_params=pltpu.CompilerParams(
            dimension_semantics=("parallel",)),
    )(params, x2d)

    out = out2d.reshape(-1)
    if n_slab != n:
        out = out[:n]
    return out.reshape(orig_shape)


def exponential_gf_ref(x, m, s):
    """Pure-JAX reference matching the PyTorch forward exactly."""
    return _ref_formula(x, m, s)


if __name__ == "__main__":
    key = jax.random.PRNGKey(0)

    # Deterministic scalar parameters (nn.Parameter(m), nn.Parameter(s)).
    m = jnp.float32(0.15)
    s = jnp.float32(0.015)

    # Small NCHW input, consistent with a conv-pipeline growth function.
    x = jax.random.uniform(key, (2, 4, 16, 16), dtype=jnp.float32)
    out = jax.block_until_ready(exponential_gf(x, m, s))
    ref = exponential_gf_ref(x, m, s)
    assert out.shape == x.shape and out.dtype == x.dtype
    assert jnp.allclose(out, ref, atol=1e-5, rtol=1e-5), "mismatch vs reference"

    # Non-lane-aligned size + small block_rows: exercises the minimal-pad path
    # and a ragged last grid block.
    x2 = jax.random.uniform(jax.random.PRNGKey(0), (3, 1000), dtype=jnp.float32)
    out2 = jax.block_until_ready(exponential_gf(x2, m, s, block_rows=16))
    ref2 = exponential_gf_ref(x2, m, s)
    assert out2.shape == x2.shape and out2.dtype == x2.dtype
    assert jnp.allclose(out2, ref2, atol=1e-5, rtol=1e-5), "mismatch (ragged path)"

    print("KERNEL_OK")
</pallas_src>

<mosaic_0001>
module attributes {stable_mosaic.version = 11 : i64} {
  func.func @_exp_gf_kernel(%arg0: i32, %arg1: memref<3xf32, #tpu.memory_space<smem>>, %arg2: memref<16x128xf32, #tpu.memory_space<vmem>>, %arg3: memref<16x128xf32, #tpu.memory_space<vmem>>) attributes {dimension_semantics = [#tpu.dimension_semantics<parallel>], iteration_bounds = array<i64: 1>, scalar_prefetch = 0 : i64, scratch_operands = 0 : i64, tpu.core_type = #tpu.core_type<tc>, window_params = [{transform_indices = @transform_0, window_bounds = array<i64: 3>}, {transform_indices = @transform_1, window_bounds = array<i64: 16, 128>}, {transform_indices = @transform_2, window_bounds = array<i64: 16, 128>}]} {
    %c0 = arith.constant 0 : index
    %0 = memref.load %arg1[%c0] : memref<3xf32, #tpu.memory_space<smem>>
    %c1 = arith.constant 1 : index
    %1 = memref.load %arg1[%c1] : memref<3xf32, #tpu.memory_space<smem>>
    %c2 = arith.constant 2 : index
    %2 = memref.load %arg1[%c2] : memref<3xf32, #tpu.memory_space<smem>>
    %c0_0 = arith.constant 0 : index
    %c0_1 = arith.constant 0 : index
    %3 = vector.load %arg2[%c0_0, %c0_1] : memref<16x128xf32, #tpu.memory_space<vmem>>, vector<16x128xf32>
    %4 = vector.broadcast %0 : f32 to vector<16x128xf32>
    %5 = arith.subf %3, %4 : vector<16x128xf32>
    %6 = arith.mulf %5, %5 : vector<16x128xf32>
    %7 = vector.broadcast %1 : f32 to vector<16x128xf32>
    %8 = arith.mulf %6, %7 : vector<16x128xf32>
    %9 = math.exp %8 : vector<16x128xf32>
    %10 = vector.broadcast %2 : f32 to vector<16x128xf32>
    %11 = arith.mulf %10, %9 : vector<16x128xf32>
    %cst = arith.constant 1.000000e+00 : f32
    %12 = vector.broadcast %cst : f32 to vector<16x128xf32>
    %13 = arith.subf %11, %12 : vector<16x128xf32>
    %c0_2 = arith.constant 0 : index
    %c0_3 = arith.constant 0 : index
    %14 = vector.load %arg3[%c0_2, %c0_3] : memref<16x128xf32, #tpu.memory_space<vmem>>, vector<16x128xf32>
    tpu.vector_store %arg3[%c0_2, %c0_3], %13 {strides = array<i32>} : memref<16x128xf32, #tpu.memory_space<vmem>>, vector<16x128xf32>,
    return
  }
  func.func @transform_0(%arg0: i32) -> i32 {
    %c0_i32 = arith.constant 0 : i32
    %c0_i32_0 = arith.constant 0 : i32
    return %c0_i32 : i32
  }
  func.func @transform_1(%arg0: i32) -> (i32, i32) {
    %c0_i32 = arith.constant 0 : i32
    %c0_i32_0 = arith.constant 0 : i32
    return %arg0, %c0_i32 : i32, i32
  }
  func.func @transform_2(%arg0: i32) -> (i32, i32) {
    %c0_i32 = arith.constant 0 : i32
    %c0_i32_0 = arith.constant 0 : i32
    return %arg0, %c0_i32 : i32, i32
  }
}

</mosaic_0001>

<bundles_post_ra>
// kernel: exponential_gf.1
= control target key start
LH: loop header
LB: loop body
LE: loop exit
PB: predicated region body
PF: predicated region fallthrough
CT: control target
= control target key end

     0   :  { %7 = vsyncpa [#allocation3], 0  ;;  %s76_s12 = smov [#allocation2]   ;;  %s107_s0 = inlined_call_operand.vmem [shape: f32[3], index: 0, kind: input, shape index: {}]   ;;  %s108_s1 = inlined_call_operand.vmem [shape: f32[16,128], index: 1, kind: input, shape index: {}]   ;;  %s109_s2 = inlined_call_operand.vmem [shape: f32[16,128], index: 2, kind: output, shape index: {}]  }
   0x1   :  { %s13_s11 = sshll.u32 %s107_s0, 4  ;;  %s14_s11 = int_to_ptr.vmem [resolvable:$true] %s13_s11 }
   0x2   :  { %16 = dma.vmem_to_smem %s14_s11, 16, %s76_s12, [#allocation3]  }
   0x3   :  { %74 = dma.done.wait [#allocation3], 16  }
   0x4   :  { %75 = vsyncadd [#allocation3], 4294967280 }
   0x5   :  { %23 = sfence }
   0x6   :  { %s24_s13 = sld [smem:[#allocation2]]  ;;  %v27_v0 = vld [vmem:[%s108_s1] sm:$0xff]  ;;  %v28_v1 = vld [vmem:[%s108_s1 + $0x8] sm:$0xff] }
   0x7   :  { %s53_s14 = sld [smem:[#allocation2 + $0x1]] }
   0x8   :  { %s54_s0 = sld [smem:[#allocation2 + $0x2]] }
   0xc   :  { %v29_v2 = vstv %s24_s13 }
   0xd   :  { %v30_v3 = vsub.f32 %v27_v0, %v29_v2  ;;  %v31_v4 = vsub.f32 %v28_v1, %v29_v2  ;;  %v34_v5 = vstv %s53_s14 }
   0xe   :  { %v41_v12 = vstv %s54_s0 }
   0xf   :  { %v32_v6 = vmul.f32 %v30_v3, %v30_v3  ;;  %v33_v7 = vmul.f32 %v31_v4, %v31_v4 }
  0x11   :  { %v35_v8 = vmul.f32 %v34_v5, %v32_v6  ;;  %v36_v9 = vmul.f32 %v34_v5, %v33_v7 }
  0x13   :  { %v37_v10 = vmul.f32 1.442695, %v35_v8  ;;  %v39_v11 = vmul.f32 1.442695, %v36_v9 }
  0x15   :  { %58 = vpow2.f32 %v37_v10 }
  0x16   :  { %60 = vpow2.f32 %v39_v11 }
  0x1b   :  { %v59_v13 = vpop.eup %58 }
  0x1c   :  { %v61_v14 = vpop.eup %60  ;;  %v42_v15 = vmul.f32 %v59_v13, %v41_v12 }
  0x1d   :  { %v43_v16 = vmul.f32 %v61_v14, %v41_v12 }
  0x1e   :  { %v55_v17 = vadd.f32 -1.0, %v42_v15 }
  0x1f   :  { %v56_v18 = vadd.f32 -1.0, %v43_v16 }
  0x20   :  { %46 = vst [vmem:[%s109_s2] sm:$0xff] %v55_v17 }
  0x21   :  { %47 = vst [vmem:[%s109_s2 + $0x8] sm:$0xff] %v56_v18 }
  0x22   :  { %52 = vsyncpa [#allocation3], 1 }

</bundles_post_ra>
